<compile_context>
chip_gen: v6e
topology: v6e:2x2x1
jax: 0.10.0
libtpu: 0.0.40
codegen_flags: <defaults>
</compile_context>

<pallas_src>
import functools
import math

import jax
import jax.numpy as jnp
import numpy as np
from jax.experimental import pallas as pl
from jax.experimental.pallas import tpu as pltpu


# ----------------------------------------------------------------------------- kernel
def _kan_kernel(x_ref, coef_ref, w_ref, out_ref, *,
                in_pad, n_grid, spline_order, n_coeff, use_bf16):
    x = x_ref[...].astype(jnp.float32)             # (TB, in_pad)
    coef = coef_ref[...]                           # (2 + 2*order, n0*in_pad) f32

    n0 = n_grid - 1
    w0 = n0 * in_pad

    # x replicated across all knot intervals along the lane axis (group stride
    # = in_pad, a multiple of 128 -> whole-vreg copies, no relayout).
    xr = jnp.concatenate([x] * n0, axis=1)         # (TB, n0*in_pad)

    # degree-0 bases for every (interval, feature) pair; padded lanes give 0.
    lo = coef[0:1, :w0]
    hi = coef[1:2, :w0]
    B = jnp.logical_and(xr >= lo, xr < hi).astype(jnp.float32)   # (TB, w0)

    # Cox-de Boor recursion, lane-dense. Per level only the LEFT weight table
    #   L[j] = (x - t_j) / (t_{j+k} - t_j) = x*cl + ol
    # is computed; the right weight is 1 - L[j+1] (exact identity).
    for k in range(1, spline_order + 1):
        nk = n_grid - 1 - k                        # groups in the new B
        wk = nk * in_pad
        wl = (nk + 1) * in_pad                     # groups needed for L
        r = 2 + 2 * (k - 1)
        cl = coef[r + 0:r + 1, :wl]
        ol = coef[r + 1:r + 2, :wl]
        L = xr[:, :wl] * cl + ol                   # (TB, (nk+1)*in_pad)
        b_left = B[:, :wk]
        b_right = B[:, in_pad:in_pad + wk]         # 128-aligned slice
        left_w = L[:, :wk]
        right_w = 1.0 - L[:, in_pad:in_pad + wk]
        B = left_w * b_left + right_w * b_right
    # B now has shape (TB, n_coeff*in_pad), lane order = [coeff 0 | coeff 1 | ...]

    # base-branch activation: SiLU(x); sigmoid goes to the EUP (lax.logistic).
    act = x * jax.nn.sigmoid(x)

    # single fused matmul: [SiLU(x) | bases] @ [base_w.T ; scaled_spline_slab]
    operand = jnp.concatenate([act, B], axis=1)    # (TB, (n_coeff+1)*in_pad)
    if use_bf16:
        operand = operand.astype(jnp.bfloat16)
    out = jax.lax.dot_general(operand, w_ref[...],
                              (((1,), (0,)), ((), ())),
                              preferred_element_type=jnp.float32)
    out_ref[...] = out.astype(out_ref.dtype)


# ----------------------------------------------------------------------------- precompute (hoisted, cache per parameter update)
def prepare_kan_params(grid_knots, base_weight, spline_weight, spline_scaler,
                       *, spline_order, lane_align=128, use_bf16=True):
    """Build the x-independent knot/reciprocal table and fused weight slab.

    Call once per parameter update; reuse the result across forward calls.
    """
    out_features, in_features = base_weight.shape
    n_grid = grid_knots.shape[1]
    n0 = n_grid - 1
    n_coeff = n_grid - 1 - spline_order            # = grid_size + spline_order

    in_pad = pl.cdiv(in_features, lane_align) * lane_align
    out_p = max(lane_align, pl.cdiv(out_features, lane_align) * lane_align)
    max_w = n0 * in_pad

    g = jnp.transpose(grid_knots, (1, 0)).astype(jnp.float32)   # (n_grid, in)

    def pack(groups):
        # pad each per-feature group to in_pad lanes, concat, pad row to max_w
        arr = jnp.stack(groups, axis=0)                          # (ng, in)
        arr = jnp.pad(arr, ((0, 0), (0, in_pad - in_features)))
        flat = arr.reshape(-1)
        return jnp.pad(flat, (0, max_w - flat.shape[0]))

    rows = [pack([g[j] for j in range(n0)]),        # knot lo
            pack([g[j + 1] for j in range(n0)])]    # knot hi
    for k in range(1, spline_order + 1):
        ng_l = n_grid - k                            # = nk + 1 left-weight groups
        cl, ol = [], []
        for j in range(ng_l):
            inv = 1.0 / (g[j + k] - g[j])
            cl.append(inv)
            ol.append(-g[j] * inv)
        rows += [pack(cl), pack(ol)]
    coef = jnp.stack(rows, axis=0)                   # (2 + 2*order, n0*in_pad)

    # fold the standalone scaler into the spline weights once and build one
    # weight slab whose row order matches the kernel operand lane order:
    #   rows [0, in_pad)                 -> base_weight.T (zero-padded rows)
    #   rows [in_pad*(1+c) + i]          -> scaled_spline_weight[o, i, c]
    scaled_w = (spline_weight.astype(jnp.float32)
                * spline_scaler.astype(jnp.float32)[..., None])  # (out, in, ncoef)
    sp = jnp.transpose(scaled_w, (2, 1, 0))          # (ncoef, in, out)
    sp = jnp.pad(sp, ((0, 0), (0, in_pad - in_features), (0, 0)))
    sp = sp.reshape(n_coeff * in_pad, out_features)
    bw = jnp.pad(base_weight.astype(jnp.float32).T,
                 ((0, in_pad - in_features), (0, 0)))
    w_slab = jnp.concatenate([bw, sp], axis=0)       # ((ncoef+1)*in_pad, out)
    w_slab = jnp.pad(w_slab, ((0, 0), (0, out_p - out_features)))
    if use_bf16:
        w_slab = w_slab.astype(jnp.bfloat16)

    meta = dict(in_features=in_features, in_pad=in_pad, n_grid=n_grid,
                spline_order=spline_order, n_coeff=n_coeff,
                out_features=out_features, out_p=out_p, use_bf16=use_bf16)
    return coef, w_slab, meta


# ----------------------------------------------------------------------------- forward
def kan_forward(x, coef, w_slab, meta, *, block_b=256, block_o=256,
                vmem_limit_bytes=40 * 1024 * 1024):
    """Pallas forward of EfficientKANLayer using precomputed tables.

    x: (..., in_features).  coef/w_slab/meta from prepare_kan_params().
    """
    in_features = meta["in_features"]
    in_pad = meta["in_pad"]
    n_grid = meta["n_grid"]
    spline_order = meta["spline_order"]
    n_coeff = meta["n_coeff"]
    out_features = meta["out_features"]
    out_p = meta["out_p"]
    use_bf16 = meta["use_bf16"]
    k_total = (n_coeff + 1) * in_pad                 # multiple of 128

    orig_shape = x.shape
    xf = x.reshape(-1, in_features)
    batch = xf.shape[0]

    # batch tile: requested size, clamped (multiple of 8) for tiny batches
    block_b = max(8, min(block_b, pl.cdiv(batch, 8) * 8))
    batch_p = pl.cdiv(batch, block_b) * block_b

    # out tile: multiple of 128, >= 128, and a divisor of out_p
    block_o = max(128, min((block_o // 128) * 128, out_p))
    while out_p % block_o != 0:
        block_o -= 128

    xf = jnp.pad(xf, ((0, batch_p - batch), (0, in_pad - in_features)))

    kernel = functools.partial(_kan_kernel, in_pad=in_pad, n_grid=n_grid,
                               spline_order=spline_order, n_coeff=n_coeff,
                               use_bf16=use_bf16)

    # Grid: out_features axis OUTER, batch axis INNER -> the weight-slab block
    # index is unchanged across the inner batch loop and is not re-fetched.
    out = pl.pallas_call(
        kernel,
        out_shape=jax.ShapeDtypeStruct((batch_p, out_p), x.dtype),
        grid=(out_p // block_o, batch_p // block_b),
        in_specs=[
            pl.BlockSpec((block_b, in_pad), lambda o, b: (b, 0)),
            pl.BlockSpec(coef.shape, lambda o, b: (0, 0)),
            pl.BlockSpec((k_total, block_o), lambda o, b: (0, o)),
        ],
        out_specs=pl.BlockSpec((block_b, block_o), lambda o, b: (b, o)),
        compiler_params=pltpu.CompilerParams(
            dimension_semantics=("parallel", "parallel"),
            vmem_limit_bytes=vmem_limit_bytes),
    )(xf, coef, w_slab)

    out = out[:batch, :out_features]
    return out.reshape(*orig_shape[:-1], out_features)


def kan_forward_full(x, grid_knots, base_weight, spline_weight, spline_scaler,
                     *, spline_order, use_bf16=True, **kw):
    """Convenience one-shot wrapper (prepare + forward). Prefer caching
    prepare_kan_params() outside the call for repeated forwards."""
    coef, w_slab, meta = prepare_kan_params(
        grid_knots, base_weight, spline_weight, spline_scaler,
        spline_order=spline_order, use_bf16=use_bf16)
    return kan_forward(x, coef, w_slab, meta, **kw)


# ----------------------------------------------------------------------------- reference (pure JAX, f32)
def kan_forward_ref(x, grid_knots, base_weight, spline_weight, spline_scaler,
                    *, spline_order):
    out_features, in_features = base_weight.shape
    orig_shape = x.shape
    xf = x.reshape(-1, in_features)
    act = xf * jax.nn.sigmoid(xf)
    base_out = act @ base_weight.T

    g = grid_knots
    xe = xf[:, :, None]
    bases = ((xe >= g[:, :-1]) & (xe < g[:, 1:])).astype(xf.dtype)
    for k in range(1, spline_order + 1):
        bases = ((xe - g[:, :-(k + 1)]) / (g[:, k:-1] - g[:, :-(k + 1)]) * bases[:, :, :-1]
                 + (g[:, k + 1:] - xe) / (g[:, k + 1:] - g[:, 1:-k]) * bases[:, :, 1:])
    scaled_w = spline_weight * spline_scaler[..., None]
    spline_out = bases.reshape(xf.shape[0], -1) @ scaled_w.reshape(out_features, -1).T
    return (base_out + spline_out).reshape(*orig_shape[:-1], out_features)


# ----------------------------------------------------------------------------- params
def make_grid_buffer(in_features, grid_size, spline_order, grid_range=(-1.0, 1.0)):
    h = (grid_range[1] - grid_range[0]) / grid_size
    knots = (jnp.arange(-spline_order, grid_size + spline_order + 1,
                        dtype=jnp.float32) * h + grid_range[0])
    return jnp.broadcast_to(knots[None, :], (in_features, knots.shape[0]))


def init_params(key, in_features, out_features, grid_size, spline_order):
    # Deterministic synthetic init (shapes match the PyTorch module).
    # TODO(synk): PyTorch init uses kaiming_uniform + torch.linalg.lstsq (curve2coeff);
    #             replaced here with deterministic uniform init (forward semantics unchanged).
    k1, k2, k3 = jax.random.split(key, 3)
    bound = 1.0 / math.sqrt(in_features)
    base_weight = jax.random.uniform(k1, (out_features, in_features),
                                     minval=-bound, maxval=bound, dtype=jnp.float32)
    spline_weight = jax.random.uniform(
        k2, (out_features, in_features, grid_size + spline_order),
        minval=-0.1, maxval=0.1, dtype=jnp.float32)
    spline_scaler = jax.random.uniform(k3, (out_features, in_features),
                                       minval=-bound, maxval=bound, dtype=jnp.float32)
    return base_weight, spline_weight, spline_scaler


# ----------------------------------------------------------------------------- main
if __name__ == "__main__":
    in_features, out_features = 16, 32
    grid_size, spline_order = 5, 3

    key = jax.random.PRNGKey(0)
    kx, kp = jax.random.split(key)
    # x: (batch=2, seq=7, in_features=16); flattened token count (14) is not a
    # multiple of the batch tile to exercise padding.
    x = jax.random.uniform(kx, (2, 7, in_features),
                           minval=-1.0, maxval=1.0, dtype=jnp.float32)

    base_weight, spline_weight, spline_scaler = init_params(
        kp, in_features, out_features, grid_size, spline_order)
    grid_knots = make_grid_buffer(in_features, grid_size, spline_order)

    # Precompute hoisted out of the forward call (cache per parameter update).
    coef, w_slab, meta = prepare_kan_params(
        grid_knots, base_weight, spline_weight, spline_scaler,
        spline_order=spline_order, use_bf16=True)

    # block_b=8 so the (swapped) grid has 2 inner batch steps with a resident
    # weight slab; production defaults are block_b=256, block_o=256.
    out = kan_forward(x, coef, w_slab, meta, block_b=8, block_o=256)
    out = jax.block_until_ready(out)

    ref = kan_forward_ref(x, grid_knots, base_weight, spline_weight, spline_scaler,
                          spline_order=spline_order)
    # bf16 MXU operands with f32 accumulation -> relaxed tolerance vs f32 ref.
    np.testing.assert_allclose(np.asarray(out), np.asarray(ref),
                               rtol=2e-2, atol=2e-2)
    assert out.shape == (2, 7, out_features)
    print("KERNEL_OK")
</pallas_src>

<mosaic_0001>
module attributes {stable_mosaic.version = 11 : i64} {
  func.func @_kan_kernel(%arg0: i32, %arg1: i32, %arg2: memref<8x128xf32, #tpu.memory_space<vmem>>, %arg3: memref<8x1408xf32, #tpu.memory_space<vmem>>, %arg4: memref<1152x128xbf16, #tpu.memory_space<vmem>>, %arg5: memref<8x128xf32, #tpu.memory_space<vmem>>) attributes {dimension_semantics = [#tpu.dimension_semantics<parallel>, #tpu.dimension_semantics<parallel>], iteration_bounds = array<i64: 1, 2>, scalar_prefetch = 0 : i64, scratch_operands = 0 : i64, tpu.core_type = #tpu.core_type<tc>, window_params = [{transform_indices = @transform_0, window_bounds = array<i64: 8, 128>}, {pipeline_mode = #tpu.pipeline_mode<synchronous>, transform_indices = @transform_1, window_bounds = array<i64: 8, 1408>}, {transform_indices = @transform_2, window_bounds = array<i64: 1152, 128>}, {transform_indices = @transform_3, window_bounds = array<i64: 8, 128>}]} {
    %c0 = arith.constant 0 : index
    %c0_0 = arith.constant 0 : index
    %0 = vector.load %arg2[%c0, %c0_0] : memref<8x128xf32, #tpu.memory_space<vmem>>, vector<8x128xf32>
    %c0_1 = arith.constant 0 : index
    %c0_2 = arith.constant 0 : index
    %1 = vector.load %arg3[%c0_1, %c0_2] : memref<8x1408xf32, #tpu.memory_space<vmem>>, vector<8x1408xf32>
    %2 = tpu.concatenate %0, %0, %0, %0, %0, %0, %0, %0, %0, %0, %0 in 1 : vector<8x128xf32>, vector<8x128xf32>, vector<8x128xf32>, vector<8x128xf32>, vector<8x128xf32>, vector<8x128xf32>, vector<8x128xf32>, vector<8x128xf32>, vector<8x128xf32>, vector<8x128xf32>, vector<8x128xf32> -> vector<8x1408xf32>
    %3 = vector.extract_strided_slice %1 {offsets = [0, 0], sizes = [1, 1408], strides = [1, 1]} : vector<8x1408xf32> to vector<1x1408xf32>
    %4 = vector.extract_strided_slice %1 {offsets = [1, 0], sizes = [1, 1408], strides = [1, 1]} : vector<8x1408xf32> to vector<1x1408xf32>
    %5 = vector.broadcast %3 : vector<1x1408xf32> to vector<8x1408xf32>
    %6 = arith.cmpf oge, %2, %5 : vector<8x1408xf32>
    %7 = vector.broadcast %4 : vector<1x1408xf32> to vector<8x1408xf32>
    %8 = arith.cmpf olt, %2, %7 : vector<8x1408xf32>
    %9 = arith.andi %6, %8 : vector<8x1408xi1>
    %10 = arith.extui %9 : vector<8x1408xi1> to vector<8x1408xi32>
    %11 = arith.sitofp %10 : vector<8x1408xi32> to vector<8x1408xf32>
    %12 = vector.extract_strided_slice %1 {offsets = [2, 0], sizes = [1, 1408], strides = [1, 1]} : vector<8x1408xf32> to vector<1x1408xf32>
    %13 = vector.extract_strided_slice %1 {offsets = [3, 0], sizes = [1, 1408], strides = [1, 1]} : vector<8x1408xf32> to vector<1x1408xf32>
    %14 = vector.broadcast %12 : vector<1x1408xf32> to vector<8x1408xf32>
    %15 = arith.mulf %2, %14 : vector<8x1408xf32>
    %16 = vector.broadcast %13 : vector<1x1408xf32> to vector<8x1408xf32>
    %17 = arith.addf %15, %16 : vector<8x1408xf32>
    %18 = vector.extract_strided_slice %11 {offsets = [0, 0], sizes = [8, 1280], strides = [1, 1]} : vector<8x1408xf32> to vector<8x1280xf32>
    %19 = vector.extract_strided_slice %11 {offsets = [0, 128], sizes = [8, 1280], strides = [1, 1]} : vector<8x1408xf32> to vector<8x1280xf32>
    %20 = vector.extract_strided_slice %17 {offsets = [0, 0], sizes = [8, 1280], strides = [1, 1]} : vector<8x1408xf32> to vector<8x1280xf32>
    %21 = vector.extract_strided_slice %17 {offsets = [0, 128], sizes = [8, 1280], strides = [1, 1]} : vector<8x1408xf32> to vector<8x1280xf32>
    %cst = arith.constant 1.000000e+00 : f32
    %22 = vector.broadcast %cst : f32 to vector<8x1280xf32>
    %23 = arith.subf %22, %21 : vector<8x1280xf32>
    %24 = arith.mulf %20, %18 : vector<8x1280xf32>
    %25 = arith.mulf %23, %19 : vector<8x1280xf32>
    %26 = arith.addf %24, %25 : vector<8x1280xf32>
    %27 = vector.extract_strided_slice %1 {offsets = [4, 0], sizes = [1, 1280], strides = [1, 1]} : vector<8x1408xf32> to vector<1x1280xf32>
    %28 = vector.extract_strided_slice %1 {offsets = [5, 0], sizes = [1, 1280], strides = [1, 1]} : vector<8x1408xf32> to vector<1x1280xf32>
    %29 = vector.extract_strided_slice %2 {offsets = [0, 0], sizes = [8, 1280], strides = [1, 1]} : vector<8x1408xf32> to vector<8x1280xf32>
    %30 = vector.broadcast %27 : vector<1x1280xf32> to vector<8x1280xf32>
    %31 = arith.mulf %29, %30 : vector<8x1280xf32>
    %32 = vector.broadcast %28 : vector<1x1280xf32> to vector<8x1280xf32>
    %33 = arith.addf %31, %32 : vector<8x1280xf32>
    %34 = vector.extract_strided_slice %26 {offsets = [0, 0], sizes = [8, 1152], strides = [1, 1]} : vector<8x1280xf32> to vector<8x1152xf32>
    %35 = vector.extract_strided_slice %26 {offsets = [0, 128], sizes = [8, 1152], strides = [1, 1]} : vector<8x1280xf32> to vector<8x1152xf32>
    %36 = vector.extract_strided_slice %33 {offsets = [0, 0], sizes = [8, 1152], strides = [1, 1]} : vector<8x1280xf32> to vector<8x1152xf32>
    %37 = vector.extract_strided_slice %33 {offsets = [0, 128], sizes = [8, 1152], strides = [1, 1]} : vector<8x1280xf32> to vector<8x1152xf32>
    %cst_3 = arith.constant 1.000000e+00 : f32
    %38 = vector.broadcast %cst_3 : f32 to vector<8x1152xf32>
    %39 = arith.subf %38, %37 : vector<8x1152xf32>
    %40 = arith.mulf %36, %34 : vector<8x1152xf32>
    %41 = arith.mulf %39, %35 : vector<8x1152xf32>
    %42 = arith.addf %40, %41 : vector<8x1152xf32>
    %43 = vector.extract_strided_slice %1 {offsets = [6, 0], sizes = [1, 1152], strides = [1, 1]} : vector<8x1408xf32> to vector<1x1152xf32>
    %44 = vector.extract_strided_slice %1 {offsets = [7, 0], sizes = [1, 1152], strides = [1, 1]} : vector<8x1408xf32> to vector<1x1152xf32>
    %45 = vector.extract_strided_slice %2 {offsets = [0, 0], sizes = [8, 1152], strides = [1, 1]} : vector<8x1408xf32> to vector<8x1152xf32>
    %46 = vector.broadcast %43 : vector<1x1152xf32> to vector<8x1152xf32>
    %47 = arith.mulf %45, %46 : vector<8x1152xf32>
    %48 = vector.broadcast %44 : vector<1x1152xf32> to vector<8x1152xf32>
    %49 = arith.addf %47, %48 : vector<8x1152xf32>
    %50 = vector.extract_strided_slice %42 {offsets = [0, 0], sizes = [8, 1024], strides = [1, 1]} : vector<8x1152xf32> to vector<8x1024xf32>
    %51 = vector.extract_strided_slice %42 {offsets = [0, 128], sizes = [8, 1024], strides = [1, 1]} : vector<8x1152xf32> to vector<8x1024xf32>
    %52 = vector.extract_strided_slice %49 {offsets = [0, 0], sizes = [8, 1024], strides = [1, 1]} : vector<8x1152xf32> to vector<8x1024xf32>
    %53 = vector.extract_strided_slice %49 {offsets = [0, 128], sizes = [8, 1024], strides = [1, 1]} : vector<8x1152xf32> to vector<8x1024xf32>
    %cst_4 = arith.constant 1.000000e+00 : f32
    %54 = vector.broadcast %cst_4 : f32 to vector<8x1024xf32>
    %55 = arith.subf %54, %53 : vector<8x1024xf32>
    %56 = arith.mulf %52, %50 : vector<8x1024xf32>
    %57 = arith.mulf %55, %51 : vector<8x1024xf32>
    %58 = arith.addf %56, %57 : vector<8x1024xf32>
    %59 = arith.negf %0 : vector<8x128xf32>
    %60 = math.exp %59 : vector<8x128xf32>
    %cst_5 = arith.constant 1.000000e+00 : f32
    %61 = vector.broadcast %cst_5 : f32 to vector<8x128xf32>
    %62 = arith.addf %61, %60 : vector<8x128xf32>
    %63 = arith.divf %61, %62 : vector<8x128xf32>
    %64 = arith.mulf %0, %63 : vector<8x128xf32>
    %65 = tpu.concatenate %64, %58 in 1 : vector<8x128xf32>, vector<8x1024xf32> -> vector<8x1152xf32>
    %66 = arith.truncf %65 : vector<8x1152xf32> to vector<8x1152xbf16>
    %c0_6 = arith.constant 0 : index
    %c0_7 = arith.constant 0 : index
    %67 = vector.load %arg4[%c0_6, %c0_7] : memref<1152x128xbf16, #tpu.memory_space<vmem>>, vector<1152x128xbf16>
    %cst_8 = arith.constant dense<0.000000e+00> : vector<8x128xf32>
    %68 = tpu.matmul %66, %67, %cst_8 {dimension_numbers = #tpu.dot_dimension_numbers<[1], [0], [0], [1], [0, 0, 1, 1], [], []>} : vector<8x1152xbf16>, vector<1152x128xbf16>, vector<8x128xf32> -> vector<8x128xf32>
    %c0_9 = arith.constant 0 : index
    %c0_10 = arith.constant 0 : index
    %69 = vector.load %arg5[%c0_9, %c0_10] : memref<8x128xf32, #tpu.memory_space<vmem>>, vector<8x128xf32>
    tpu.vector_store %arg5[%c0_9, %c0_10], %68 {strides = array<i32>} : memref<8x128xf32, #tpu.memory_space<vmem>>, vector<8x128xf32>,
    return
  }
  func.func @transform_0(%arg0: i32, %arg1: i32) -> (i32, i32) {
    %c0_i32 = arith.constant 0 : i32
    %c0_i32_0 = arith.constant 0 : i32
    return %arg1, %c0_i32 : i32, i32
  }
  func.func @transform_1(%arg0: i32, %arg1: i32) -> (i32, i32) {
    %c0_i32 = arith.constant 0 : i32
    %c0_i32_0 = arith.constant 0 : i32
    %c0_i32_1 = arith.constant 0 : i32
    return %c0_i32, %c0_i32_0 : i32, i32
  }
  func.func @transform_2(%arg0: i32, %arg1: i32) -> (i32, i32) {
    %c0_i32 = arith.constant 0 : i32
    %c0_i32_0 = arith.constant 0 : i32
    return %c0_i32, %arg0 : i32, i32
  }
  func.func @transform_3(%arg0: i32, %arg1: i32) -> (i32, i32) {
    %c0_i32 = arith.constant 0 : i32
    return %arg1, %arg0 : i32, i32
  }
}

</mosaic_0001>

<bundles_post_ra>
// kernel: tpu_custom_call.1
= control target key start
LH: loop header
LB: loop body
LE: loop exit
PB: predicated region body
PF: predicated region fallthrough
CT: control target
= control target key end

     0   :  { %8 = vsyncpa [#allocation3], 0  ;;  %s2902_s0 = inlined_call_operand.hbm [shape: f32[16,128], index: 0, kind: input, shape index: {}]   ;;  %s2903_s1 = inlined_call_operand.hbm [shape: f32[8,1408], index: 1, kind: input, shape index: {}]   ;;  %s2904_s2 = inlined_call_operand.hbm [shape: bf16[1152,128], index: 2, kind: input, shape index: {}]   ;;  %s2905_s3 = inlined_call_operand.hbm [shape: f32[16,128], index: 3, kind: output, shape index: {}]  }
   0x1   :  { %10 = vsyncpa [#allocation3 + $0x1], 0 }
   0x2   :  { %11 = vsyncpa [#allocation6], 0 }
   0x3   :  { %12 = vsyncpa [#allocation4], 0 }
   0x4   :  { %14 = vsyncpa [#allocation4 + $0x1], 0  ;;  %s2281_s12 = smov 0   ;;  %s2283_s13 = smov 0  }
   0x5   :  { %s2285_s14 = smov 0   ;;  %s2287_s15 = smov 0  }
   0x6   :  { %s2289_s16 = smov 0   ;;  %s2291_s17 = smov 0  }
   0x7 LB: > { %s1706_s18 = sadd.s32 4294967295, %s2251_s17   ;;  %s1707_s19 = sadd.s32 4294967294, %s2251_s17   ;;  %s2251_s17 = sphi %s2291_s17, %s20_s17   ;;  %s2247_s16 = sphi %s2289_s16, %s2952_s16   ;;  %s2243_s15 = sphi %s2287_s15, %s2951_s15   ;;  %s2239_s14 = sphi %s2285_s14, %s2950_s14   ;;  %s2235_s13 = sphi %s2283_s13, %s2949_s13   ;;  %s2231_s12 = sphi %s2281_s12, %s2948_s12  }
   0x8   : > { %p52_p0 = scmp.ne.s32.totalorder %s2235_s13, %s2231_s12  ;;  %p2315_p1 = scmp.eq.s32.totalorder %s1706_s18, 0 }
   0x9   : > { %p2319_p2 = scmp.eq.s32.totalorder %s1706_s18, 1  ;;  %p131_p3 = scmp.eq.s32.totalorder %s1707_s19, 1 }
   0xa   : > { %s2910_s20 = scalar_select %p2315_p1, 1, 0 }
   0xb   : > { %s2911_s21 = scalar_select %p2319_p2, 1, 0 }
   0xc   : > { %p2325_p4 = por %p2315_p1, %p52_p0  ;;  %p1708_p5 = scmp.ge.s32.totalorder %s2251_s17, 1 }
   0xd   : > { %p2330_p6 = por %p131_p3, %p52_p0  ;;  %p138_p7 = scmp.lt.s32.totalorder %s2251_s17, 3 }
   0xe   : > { %s2912_s22 = scalar_select %p2325_p4, 1, 0 }
   0xf   : > { %s2913_s23 = scalar_select %p2330_p6, 1, 0 }
  0x10   : > { %p2335_p8 = pnand %p1708_p5, %p138_p7  ;;  %s2253_s25 = smov [#allocation5]  }
  0x11   : > { %s151_s26 = sshll.u32 %s2253_s25, 4  ;;  %s2254_s27 = smov [#allocation7]   ;;  %s152_s26 = int_to_ptr.vmem [resolvable:$true] %s151_s26 }
  0x12   : > { %s2914_s24 = scalar_select %p2335_p8, 1, 0 }
  0x13   : > { %p1936_p10 = pneg %p2335_p8  ;;  %s163_s28 = sshll.u32 %s2254_s27, 4  ;;  %s164_s28 = int_to_ptr.vmem [resolvable:$true] %s163_s28 }
  0x14   : > { %s2098_s30 = scalar_lea.vmem %s152_s26, 1408  ;;  %p2106_p5 = scmp.lt.s32.totalorder %s152_s26, %s152_s26 }
  0x15   : > { %p2344_p11 = pnand %p1936_p10, %p2315_p1  ;;  %p2099_p13 = scmp.ne.s32.totalorder %s152_s26, %s2098_s30 }
  0x16   : > { %p2107_p7 = scmp.lt.s32.totalorder %s2098_s30, %s2098_s30 }
  0x17   : > { %p2089_p12 = pneg %p2344_p11 }
  0x18   : > { %p2108_p9 = por %p2107_p7, %p2106_p5 }
  0x19   : > { %p2101_p0 = pnand %p2099_p13, %p2089_p12 }
  0x1b   : > { %p2102_p3 = pneg %p2101_p0 }
  0x1d   : > { %p2109_p6 = pnand %p2108_p9, %p2102_p3 }
  0x1f   : > { %2112 = shalt.err (!%p2109_p6)
}
  0x20   : > { %1939 = dma.hbm_to_vmem [thread:$0]  (!%p2344_p11), %s2903_s1, 1408, %s152_s26, [#allocation6]  }
  0x21   : > { %s2124_s6 = scalar_lea.vmem %s164_s28, 9216  ;;  %p2132_p13 = scmp.lt.s32.totalorder %s164_s28, %s164_s28 }
  0x22   : > { %p2125_p10 = scmp.ne.s32.totalorder %s164_s28, %s2124_s6  ;;  %p2133_p0 = scmp.lt.s32.totalorder %s2124_s6, %s2124_s6 }
  0x24   : > { %p2127_p1 = pnand %p2125_p10, %p2089_p12  ;;  %p2134_p8 = por %p2133_p0, %p2132_p13 }
  0x26   : > { %p2128_p4 = pneg %p2127_p1 }
  0x28   : > { %p2135_p2 = pnand %p2134_p8, %p2128_p4 }
  0x2a   : > { %2138 = shalt.err (!%p2135_p2)
}
  0x2b   : > { %s2255_s7 = smov 64   ;;  %s2256_s8 = smov 4  }
  0x2c   : > { %1942 = dma.hbm_to_vmem [thread:$0]  (!%p2344_p11), %s2904_s2, 9216, %s164_s28, [#allocation6], %s2255_s7, %s2255_s7, %s2256_s8  }
  0x2d   : > { %s29_s11 = sadd.s32 1, %s2247_s16  ;;  %s39_s18 = sadd.s32 1, %s2239_s14 }
  0x2e   : > { %p30_p1 = scmp.ge.s32.totalorder %s29_s11, 2  ;;  %p46_p2 = scmp.ne.s32.totalorder %s2239_s14, %s2235_s13 }
  0x2f   : > { %p47_p4 = scmp.eq.s32.totalorder %s2251_s17, 0  ;;  %p1953_p6 = scmp.lt.s32.totalorder %s2251_s17, 2 }
  0x30   : > { %s2954_s11 = smov (%p30_p1, %s29_s11), 0  ;;  %p2916_p9 = scmp.ne.s32.totalorder %s2911_s21, 0 }
  0x31   : > { %p48_p8 = por %p47_p4, %p46_p2  ;;  %s36_s25 = ssub.s32 %s2247_s16, %s2954_s11 }
  0x32   : > { %p2376_p12 = por %p2916_p9, %p46_p2  ;;  %s177_s26 = sand.u32 1, %s2239_s14  }
  0x33   : > { %p37_p3 = scmp.eq.s32.totalorder %s36_s25, 0  ;;  %s1712_s27 = sshll.u32 %s177_s26, 3 }
  0x34   : > { %s1713_s28 = sshll.u32 %s2247_s16, 7  ;;  %s181_s6 = scalar_lea.vmem [#allocation2], %s1712_s27 }
  0x35   : > { %s2385_s29 = scalar_select %p37_p3, %s2239_s14, %s39_s18  }
  0x36   : > { %s186_s5 = scalar_lea.hbm %s2902_s0, %s1713_s28  ;;  %s188_s7 = sshll.u32 %s181_s6, 4  ;;  %s189_s7 = int_to_ptr.vmem [resolvable:$true] %s188_s7 }
  0x37   : > { %p2392_p11 = pnand %p1953_p6, %p48_p8  ;;  %s178_s8 = scalar_lea.sflag [#allocation3], %s177_s26 }
  0x38   : > { %s2152_s9 = scalar_lea.vmem %s189_s7, 128  ;;  %s2257_s10 = smov [#allocation2]  }
  0x39   : > { %p2141_p5 = pneg %p2392_p11  ;;  %p2153_p7 = scmp.ne.s32.totalorder %s189_s7, %s2152_s9 }
  0x3a   : > { %s2157_s18 = sshll.u32 %s2257_s10, 4  ;;  %s2158_s18 = int_to_ptr.vmem [resolvable:$false] %s2157_s18 }
  0x3b   : > { %p2155_p10 = pnand %p2153_p7, %p2141_p5  ;;  %s2159_s25 = scalar_lea.vmem %s2158_s18, 256 }
  0x3c   : > { %p2160_p0 = scmp.lt.s32.totalorder %s189_s7, %s2158_s18  ;;  %p2161_p1 = scmp.lt.s32.totalorder %s2159_s25, %s2152_s9 }
  0x3d   : > { %p2156_p13 = pneg %p2155_p10 }
  0x3e   : > { %p2162_p2 = por %p2161_p1, %p2160_p0 }
  0x40   : > { %p2163_p4 = pnand %p2162_p2, %p2156_p13 }
  0x42   : > { %2166 = shalt.err (!%p2163_p4)
}
  0x43   : > { %1946 = dma.hbm_to_vmem [thread:$0]  (!%p2392_p11), %s186_s5, 128, %s189_s7, %s178_s8  }
  0x44   : > { %p2919_p6 = scmp.ne.s32.totalorder %s2914_s24, 0 }
  0x45   : > { %s2403_s26 = sand.u32 (!%p2919_p6), 1, %s2235_s13   ;;  %p2920_p8 = scmp.ne.s32.totalorder (!%p2919_p6), %s2912_s22, 0 }
  0x46   : > { %197 = sbr.rel (%p2919_p6) target bundleno = 432 (0x1b0), region = 32  ;;  %s1715_s27 = sshll.u32 (!%p2919_p6), %s2403_s26, 3 }
  0x47   : > { %s200_s28 = scalar_lea.sflag (!%p2919_p6), [#allocation3], %s2403_s26  ;;  %s2409_s30 = scalar_lea.vmem (!%p2919_p6), [#allocation2], %s1715_s27 }
  0x4b   : > { %2218 = dma.done.wait (%p2920_p8), %s200_s28, 128  }
  0x4c   : > { %2220 = vsyncadd (%p2920_p8), %s200_s28, 4294967168  ;;  %p2921_p9 = scmp.ne.s32.totalorder %s2910_s20, 0 }
  0x4e   : > { %2222 = dma.done.wait (%p2921_p9), [#allocation6], 10624  }
  0x4f   : > { %2224 = vsyncadd (%p2921_p9), [#allocation6], 4294956672  ;;  %v2011_v0 = vld [vmem:[#allocation7 + $0x78] sm:$0xff]   ;;  %v2015_v4 = vld [vmem:[#allocation7 + $0x70] sm:$0xff]   ;;  %v247_v23 = vlaneseq  ;;  %v2258_v62 = vmov 0.0   ;;  %s1804_s20 = sshll.u32 %s2243_s15, 7 }
  0x50   : > { %v2012_v1 = vld [vmem:[#allocation7 + $0x38] sm:$0xff]   ;;  %1807 = vmatprep.subr.bf16.mxu0 %v2011_v0  ;;  %v2016_v5 = vld [vmem:[#allocation7 + $0x30] sm:$0xff]   ;;  %v2019_v8 = vld [vmem:[#allocation7 + $0x68] sm:$0xff]   ;;  %s233_s22 = scalar_lea.vmem [#allocation8], %s1715_s27  ;;  %s2854_s6 = scalar_lea.hbm %s2905_s3, %s1804_s20 }
  0x51   : > { %v2013_v2 = vld [vmem:[#allocation7 + $0xf8] sm:$0xff]   ;;  %1808 = vmatpush3.bf16.msra.mxu0 %v2012_v1  ;;  %v2017_v6 = vld [vmem:[#allocation7 + $0xf0] sm:$0xff]   ;;  %v2020_v9 = vld [vmem:[#allocation7 + $0x28] sm:$0xff]   ;;  %v248_v28 = vshrl.u32 %v247_v23, 7  ;;  %s1606_s24 = sshll.u32 %s233_s22, 4  ;;  %s1592_s15 = scalar_lea.sflag [#allocation4], %s2403_s26  ;;  %s2856_s24 = int_to_ptr.vmem [resolvable:$true] %s1606_s24 }
  0x52   : > { %v2014_v3 = vld [vmem:[#allocation7 + $0xb8] sm:$0xff]   ;;  %1829 = vmatprep.subr.bf16.mxu1 %v2013_v2  ;;  %1809 = vmatprep.subr.bf16.mxu0 %v2015_v4  ;;  %v2018_v7 = vld [vmem:[#allocation7 + $0xb0] sm:$0xff]   ;;  %v2021_v10 = vld [vmem:[#allocation7 + $0xe8] sm:$0xff]   ;;  %s2167_s7 = scalar_lea.vmem %s2856_s24, 128  ;;  %s2260_s21 = smov [#allocation8]  }
  0x53   : > { %1830 = vmatpush3.bf16.msra.mxu1 %v2014_v3  ;;  %v2022_v11 = vld [vmem:[#allocation7 + $0xa8] sm:$0xff]   ;;  %v2023_v12 = vld [vmem:[#allocation7 + $0x60] sm:$0xff]   ;;  %v2027_v16 = vld [vmem:[#allocation7 + $0x58] sm:$0xff]   ;;  %v2419_v31 = vsub.s32 0, %v248_v28  ;;  %v2421_v33 = vsub.s32 1, %v248_v28  ;;  %v2423_v35 = vsub.s32 2, %v248_v28  ;;  %p2168_p3 = scmp.ne.s32.totalorder %s2856_s24, %s2167_s7 }
  0x54   : > { %1831 = vmatprep.subr.bf16.mxu1 %v2017_v6  ;;  %v2024_v13 = vld [vmem:[#allocation7 + $0x20] sm:$0xff]   ;;  %v2028_v17 = vld [vmem:[#allocation7 + $0x18] sm:$0xff]   ;;  %v2031_v20 = vld [vmem:[#allocation7 + $0x50] sm:$0xff]   ;;  %v2425_v37 = vsub.s32 3, %v248_v28  ;;  %v2431_v40 = vsub.s32 4, %v248_v28  ;;  %v2433_v41 = vsub.s32 5, %v248_v28 }
  0x55   : > { %1810 = vmatpush3.bf16.msra.mxu0 %v2016_v5  ;;  %v2025_v14 = vld [vmem:[#allocation7 + $0xe0] sm:$0xff]   ;;  %v2029_v18 = vld [vmem:[#allocation7 + $0xd8] sm:$0xff]   ;;  %v2032_v21 = vld [vmem:[#allocation7 + $0x10] sm:$0xff]   ;;  %v2435_v42 = vsub.s32 6, %v248_v28  ;;  %v2437_v43 = vsub.s32 7, %v248_v28  ;;  %p2169_p11 = pnand %p2168_p3, %p2376_p12  ;;  %s2171_s8 = sshll.u32 %s2260_s21, 4  ;;  %s2172_s8 = int_to_ptr.vmem [resolvable:$false] %s2171_s8 }
  0x56   : > { %1811 = vmatprep.subr.bf16.mxu0 %v2019_v8  ;;  %v2026_v15 = vld [vmem:[#allocation7 + $0xa0] sm:$0xff]   ;;  %v2030_v19 = vld [vmem:[#allocation7 + $0x98] sm:$0xff]   ;;  %v2033_v22 = vld [vmem:[#allocation7 + $0xd0] sm:$0xff]   ;;  %s2173_s9 = scalar_lea.vmem %s2172_s8, 256  ;;  %p2174_p7 = scmp.lt.s32.totalorder %s2856_s24, %s2172_s8 }
  0x57   : > { %1832 = vmatpush3.bf16.msra.mxu1 %v2018_v7  ;;  %v2034_v24 = vld [vmem:[#allocation7 + $0x90] sm:$0xff]   ;;  %v2035_v25 = vld [vmem:[#allocation7 + $0x48] sm:$0xff]   ;;  %v2039_v30 = vld [vmem:[#allocation7 + $0x40] sm:$0xff]   ;;  %p2170_p5 = pneg %p2169_p11  ;;  %p2175_p10 = scmp.lt.s32.totalorder %s2173_s9, %s2167_s7 }
  0x58   : > { %1833 = vmatprep.subr.bf16.mxu1 %v2021_v10  ;;  %v2036_v26 = vld [vmem:[#allocation7 + $0x8] sm:$0xff]   ;;  %v2040_v32 = vld [vmem:[#allocation7] sm:$0xff]   ;;  %v2429_v39 = vld [vmem:[#allocation5 + $0x8] sm:$0xff] }
  0x59   : > { %1812 = vmatpush3.bf16.msra.mxu0 %v2020_v9  ;;  %v2037_v27 = vld [vmem:[#allocation7 + $0xc8] sm:$0xff]   ;;  %v2041_v34 = vld [vmem:[#allocation7 + $0xc0] sm:$0xff]   ;;  %v2439_v44 = vld [vmem:[#allocation5 + $0x10] sm:$0xff]  ;;  %v254_v47 = vrot.slane %v2429_v39, %v2419_v31  ;;  %v309_v49 = vrot.slane %v2429_v39, %v2421_v33  ;;  %v397_v1 = vrot.slane %v2429_v39, %v2423_v35  ;;  %v452_v7 = vrot.slane %v2429_v39, %v2425_v37  ;;  %p2176_p13 = por %p2175_p10, %p2174_p7 }
  0x5a   : > { %1813 = vmatprep.subr.bf16.mxu0 %v2023_v12  ;;  %v2038_v29 = vld [vmem:[#allocation7 + $0x88] sm:$0xff]   ;;  %v2042_v36 = vld [vmem:[#allocation7 + $0x80] sm:$0xff]   ;;  %v258_v51 = vrot.slane %v2439_v44, %v2419_v31  ;;  %v313_v53 = vrot.slane %v2439_v44, %v2421_v33  ;;  %v2043_v57 = vld [vmem:[#allocation7 + $0x178] sm:$0xff]   ;;  %v401_v2 = vrot.slane %v2439_v44, %v2423_v35  ;;  %v683_v56 = vrot.slane %v2429_v39, %v2435_v42 }
  0x5b   : > { %1834 = vmatpush3.bf16.msra.mxu1 %v2022_v11  ;;  %v2427_v38 = vld [vmem:[#allocation5] sm:$0xff]  ;;  %v2441_v45 = vld [vmem:[#allocation5 + $0x18] sm:$0xff]  ;;  %v2045_v3 = vld [vmem:[#allocation7 + $0x1f8] sm:$0xff]   ;;  %p2177_p0 = pnand %p2176_p13, %p2170_p5 }
  0x5c   : > { %1835 = vmatprep.subr.bf16.mxu1 %v2025_v14  ;;  %v250_v46 = vrot.slane %v2427_v38, %v2419_v31  ;;  %v305_v48 = vrot.slane %v2427_v38, %v2421_v33  ;;  %v2452_v50 = vld [vmem:[%s2409_s30] sm:$0xff]  ;;  %v262_v52 = vrot.slane %v2441_v45, %v2419_v31  ;;  %v317_v54 = vrot.slane %v2441_v45, %v2421_v33 }
  0x5d   : > { %1814 = vmatpush3.bf16.msra.mxu0 %v2024_v13  ;;  %vm2464_vm1 = vcmp.ge.f32.partialorder %v2452_v50, %v254_v47  ;;  %vm2470_vm3 = vcmp.lt.f32.partialorder %v2452_v50, %v309_v49  ;;  %vm2475_vm4 = vcmp.ge.f32.partialorder %v2452_v50, %v258_v51  ;;  %vm2485_vm6 = vcmp.lt.f32.partialorder %v2452_v50, %v313_v53 }
  0x5e   : > { %1815 = vmatprep.subr.bf16.mxu0 %v2027_v16  ;;  %vm291_vm0 = vcmp.ge.f32.partialorder %v2452_v50, %v250_v46  ;;  %vm346_vm2 = vcmp.lt.f32.partialorder %v2452_v50, %v305_v48  ;;  %vm2480_vm5 = vcmp.ge.f32.partialorder %v2452_v50, %v262_v52  ;;  %vm2490_vm7 = vcmp.lt.f32.partialorder %v2452_v50, %v317_v54  ;;  %vm358_vm9 = vmand %vm2464_vm1, %vm2470_vm3 }
  0x5f   : > { %1836 = vmatpush3.bf16.msra.mxu1 %v2026_v15  ;;  %vm357_vm8 = vmand %vm291_vm0, %vm346_vm2  ;;  %v393_v0 = vrot.slane %v2427_v38, %v2423_v35  ;;  %v1720_v4 = vsel %vm358_vm9, 1.0, %v2258_v62  ;;  %v405_v5 = vrot.slane %v2441_v45, %v2423_v35  ;;  %v448_v6 = vrot.slane %v2427_v38, %v2425_v37 }
  0x60   : > { %1837 = vmatprep.subr.bf16.mxu1 %v2029_v18  ;;  %v1719_v63 = vsel %vm357_vm8, 1.0, %v2258_v62  ;;  %vm359_vm10 = vmand %vm2475_vm4, %vm2485_vm6  ;;  %v435_v10 = vmul.f32 %v397_v1, %v2452_v50  ;;  %v436_v11 = vmul.f32 %v401_v2, %v2452_v50  ;;  %v456_v14 = vrot.slane %v2439_v44, %v2425_v37  ;;  %v2559_v2 = vld [vmem:[#allocation5 + $0x20] sm:$0xff] }
  0x61   : > { %1816 = vmatpush3.bf16.msra.mxu0 %v2028_v17  ;;  %vm360_vm11 = vmand %vm2480_vm5, %vm2490_vm7  ;;  %v1721_v8 = vsel %vm359_vm10, 1.0, %v2258_v62  ;;  %v434_v9 = vmul.f32 %v393_v0, %v2452_v50  ;;  %v437_v13 = vmul.f32 %v405_v5, %v2452_v50  ;;  %v460_v15 = vrot.slane %v2441_v45, %v2425_v37 }
  0x62   : > { %1817 = vmatprep.subr.bf16.mxu0 %v2031_v20  ;;  %v2525_v12 = vsel %vm360_vm11, 1.0, %v2258_v62  ;;  %v490_v17 = vadd.f32 %v452_v7, %v435_v10  ;;  %v543_v18 = vrot.slane %v2427_v38, %v2431_v40  ;;  %v491_v20 = vadd.f32 %v456_v14, %v436_v11 }
  0x63   : > { %1838 = vmatpush3.bf16.msra.mxu1 %v2030_v19  ;;  %v489_v16 = vadd.f32 %v448_v6, %v434_v9  ;;  %v547_v19 = vrot.slane %v2429_v39, %v2431_v40  ;;  %v593_v23 = vrot.slane %v2427_v38, %v2433_v41  ;;  %v597_v46 = vrot.slane %v2429_v39, %v2433_v41 }
  0x64   : > { %1839 = vmatprep.subr.bf16.mxu1 %v2033_v22  ;;  %v551_v22 = vrot.slane %v2439_v44, %v2431_v40  ;;  %v501_v28 = vsub.f32 1.0, %v491_v20  ;;  %v601_v47 = vrot.slane %v2439_v44, %v2433_v41  ;;  %v679_v52 = vrot.slane %v2427_v38, %v2435_v42 }
  0x65   : > { %1818 = vmatpush3.bf16.msra.mxu0 %v2032_v21  ;;  %v2536_v21 = vadd.f32 %v460_v15, %v437_v13  ;;  %v724_v60 = vrot.slane %v2427_v38, %v2437_v43  ;;  %v713_v1 = vmul.f32 %v683_v56, %v2452_v50  ;;  %v728_v5 = vrot.slane %v2429_v39, %v2437_v43 }
  0x66   : > { %1819 = vmatprep.subr.bf16.mxu0 %v2035_v25  ;;  %v510_v25 = vmul.f32 %v1719_v63, %v489_v16  ;;  %v521_v48 = vmul.f32 %v1721_v8, %v501_v28  ;;  %v712_v59 = vmul.f32 %v679_v52, %v2452_v50  ;;  %v266_v7 = vrot.slane %v2559_v2, %v2419_v31 }
  0x67   : > { %1840 = vmatpush3.bf16.msra.mxu1 %v2034_v24  ;;  %v500_v24 = vsub.f32 1.0, %v490_v17  ;;  %v321_v10 = vrot.slane %v2559_v2, %v2421_v33  ;;  %v2571_v11 = vadd.f32 %v728_v5, %v713_v1  ;;  %v409_v14 = vrot.slane %v2559_v2, %v2423_v35 }
  0x68   : > { %1841 = vmatprep.subr.bf16.mxu1 %v2037_v27  ;;  %v580_v27 = vmul.f32 %v543_v18, %v2452_v50  ;;  %v757_v6 = vadd.f32 %v724_v60, %v712_v59  ;;  %vm2574_vm12 = vcmp.ge.f32.partialorder %v2452_v50, %v266_v7 }
  0x69   : > { %1820 = vmatpush3.bf16.msra.mxu0 %v2036_v26  ;;  %v511_v26 = vmul.f32 %v1720_v4, %v490_v17  ;;  %vm350_vm14 = vcmp.lt.f32.partialorder %v2452_v50, %v321_v10  ;;  %v766_v17 = vsub.f32 1.0, %v2571_v11 }
  0x6a   : > { %1821 = vmatprep.subr.bf16.mxu0 %v2039_v30  ;;  %v512_v30 = vmul.f32 %v1721_v8, %v491_v20  ;;  %v630_v51 = vadd.f32 %v593_v23, %v580_v27  ;;  %vm361_vm0 = vmand %vm2574_vm12, %vm350_vm14 }
  0x6b   : > { %1842 = vmatpush3.bf16.msra.mxu1 %v2038_v29  ;;  %v502_v29 = vsub.f32 1.0, %v2536_v21 }
  0x6c   : > { %1843 = vmatprep.subr.bf16.mxu1 %v2041_v34  ;;  %v520_v34 = vmul.f32 %v1720_v4, %v500_v24 }
  0x6d   : > { %1822 = vmatpush3.bf16.msra.mxu0 %v2040_v32  ;;  %v581_v32 = vmul.f32 %v547_v19, %v2452_v50  ;;  %v522_v49 = vmul.f32 %v2525_v12, %v502_v29  ;;  %v438_v19 = vmul.f32 %v409_v14, %v2452_v50  ;;  %v555_v29 = vrot.slane %v2441_v45, %v2431_v40 }
  0x6e   : > { %1851 = vmatprep.subr.bf16.mxu0 %v2043_v57  ;;  %v530_v53 = vadd.f32 %v520_v34, %v510_v25  ;;  %v531_v57 = vadd.f32 %v521_v48, %v511_v26  ;;  %v1723_v25 = vsel %vm361_vm0, 1.0, %v2258_v62 }
  0x6f   : > { %1844 = vmatpush3.bf16.msra.mxu1 %v2042_v36  ;;  %v582_v36 = vmul.f32 %v551_v22, %v2452_v50  ;;  %v631_v54 = vadd.f32 %v597_v46, %v581_v32  ;;  %v532_v58 = vadd.f32 %v522_v49, %v512_v30  ;;  %v464_v22 = vrot.slane %v2559_v2, %v2425_v37 }
  0x70   : > { %1873 = vmatprep.subr.bf16.mxu1 %v2045_v3  ;;  %v649_v0 = vmul.f32 %v630_v51, %v530_v53  ;;  %v2561_v3 = vld [vmem:[#allocation5 + $0x28] sm:$0xff]  ;;  %v559_v30 = vrot.slane %v2559_v2, %v2431_v40  ;;  %v605_v32 = vrot.slane %v2441_v45, %v2433_v41  ;;  %v513_v46 = vmul.f32 %v2525_v12, %v2536_v21 }
  0x71   : > { %v632_v55 = vadd.f32 %v601_v47, %v582_v36  ;;  %v640_v61 = vsub.f32 1.0, %v631_v54  ;;  %v650_v4 = vmul.f32 %v631_v54, %v531_v57  ;;  %v270_v38 = vrot.slane %v2561_v3, %v2419_v31 }
  0x72   : > { %v325_v39 = vrot.slane %v2561_v3, %v2421_v33  ;;  %v413_v18 = vrot.slane %v2561_v3, %v2423_v35  ;;  %v468_v23 = vrot.slane %v2561_v3, %v2425_v37  ;;  %v493_v28 = vadd.f32 %v464_v22, %v438_v19  ;;  %v2641_v22 = vld [vmem:[#allocation5 + $0x38] sm:$0xff] }
  0x73   : > { %v641_v63 = vsub.f32 1.0, %v632_v55  ;;  %v658_v8 = vmul.f32 %v640_v61, %v531_v57  ;;  %vm296_vm13 = vcmp.ge.f32.partialorder %v2452_v50, %v270_v38  ;;  %v609_v47 = vrot.slane %v2559_v2, %v2433_v41 }
  0x74   : > { %vm351_vm15 = vcmp.lt.f32.partialorder %v2452_v50, %v325_v39  ;;  %v439_v27 = vmul.f32 %v413_v18, %v2452_v50  ;;  %v503_v48 = vsub.f32 1.0, %v493_v28  ;;  %v583_v49 = vmul.f32 %v555_v29, %v2452_v50  ;;  %v2635_v18 = vld [vmem:[#allocation5 + $0x30] sm:$0xff] }
  0x75   : > { %v659_v9 = vmul.f32 %v641_v63, %v532_v58  ;;  %v667_v15 = vadd.f32 %v658_v8, %v649_v0  ;;  %vm362_vm1 = vmand %vm296_vm13, %vm351_vm15  ;;  %v584_v51 = vmul.f32 %v559_v30, %v2452_v50  ;;  %v651_v52 = vmul.f32 %v632_v55, %v532_v58 }
  0x76   : > { %v1724_v26 = vsel %vm362_vm1, 1.0, %v2258_v62  ;;  %v494_v36 = vadd.f32 %v468_v23, %v439_v27  ;;  %v514_v56 = vmul.f32 %v1723_v25, %v493_v28  ;;  %v687_v57 = vrot.slane %v2439_v44, %v2435_v42 }
  0x77   : > { %v668_v16 = vadd.f32 %v659_v9, %v650_v4  ;;  %v774_v20 = vmul.f32 %v757_v6, %v667_v15  ;;  %v523_v59 = vmul.f32 %v1723_v25, %v503_v48  ;;  %v633_v60 = vadd.f32 %v605_v32, %v583_v49 }
  0x78   : > { %v504_v54 = vsub.f32 1.0, %v494_v36  ;;  %v2612_v61 = vadd.f32 %v609_v47, %v584_v51  ;;  %v691_v12 = vrot.slane %v2441_v45, %v2435_v42  ;;  %v714_v63 = vmul.f32 %v687_v57, %v2452_v50 }
  0x79   : > { %v782_v24 = vmul.f32 %v766_v17, %v668_v16  ;;  %v732_v55 = vrot.slane %v2439_v44, %v2437_v43  ;;  %v736_v58 = vrot.slane %v2441_v45, %v2437_v43  ;;  %v533_v0 = vadd.f32 %v523_v59, %v513_v46 }
  0x7a   : > { %v524_v21 = vmul.f32 %v1724_v26, %v504_v54  ;;  %v642_v1 = vsub.f32 1.0, %v633_v60  ;;  %v643_v4 = vsub.f32 1.0, %v2612_v61  ;;  %v715_v5 = vmul.f32 %v691_v12, %v2452_v50  ;;  %v2046_v54 = vld [vmem:[#allocation7 + $0x1b8] sm:$0xff]  }
  0x7b   : > { %v790_v34 = vadd.f32 %v782_v24, %v774_v20  ;;  %v759_v7 = vadd.f32 %v732_v55, %v714_v63  ;;  %v1730_v8 = vmul.f32 -1.442695, %v2452_v50  ;;  %v2626_v9 = vmul.f32 %v1724_v26, %v494_v36 }
  0x7c   : > { %v2623_v6 = vadd.f32 %v524_v21, %v514_v56  ;;  %v652_v38 = vmul.f32 %v633_v60, %v533_v0  ;;  %v660_v10 = vmul.f32 %v642_v1, %v533_v0  ;;  %v2628_v13 = vadd.f32 %v736_v58, %v715_v5  ;;  %v2049_v60 = vld [vmem:[#allocation7 + $0x1f0] sm:$0xff]  }
  0x7d   : > { %v806_v53 = vpack.c.bf16 %v790_v34, %v790_v34  ;;  %v767_v45 = vsub.f32 1.0, %v759_v7  ;;  %2083 = vpow2.f32 %v1730_v8  ;;  %v563_v39 = vrot.slane %v2561_v3, %v2431_v40  ;;  %v2050_v5 = vld [vmem:[#allocation7 + $0x1b0] sm:$0xff]  }
  0x7e   : > { %v661_v44 = vmul.f32 %v643_v4, %v2623_v6  ;;  %v669_v14 = vadd.f32 %v660_v10, %v651_v52  ;;  %v768_v15 = vsub.f32 1.0, %v2628_v13  ;;  %v775_v17 = vmul.f32 %v2571_v11, %v668_v16 }
  0x7f   : > { %1422 = vmatprep.mubr.bf16.mxu0 %v806_v53  ;;  %v613_v19 = vrot.slane %v2561_v3, %v2433_v41  ;;  %v274_v23 = vrot.slane %v2635_v18, %v2419_v31  ;;  %v329_v24 = vrot.slane %v2635_v18, %v2421_v33  ;;  %v417_v25 = vrot.slane %v2635_v18, %v2423_v35 }
  0x80   : > { %v2639_v20 = vadd.f32 %v661_v44, %v652_v38  ;;  %v776_v26 = vmul.f32 %v759_v7, %v669_v14  ;;  %v783_v11 = vmul.f32 %v767_v45, %v669_v14  ;;  %v278_v16 = vrot.slane %v2641_v22, %v2419_v31  ;;  %v2687_v44 = vld [vmem:[#allocation5 + $0x40] sm:$0xff] }
  0x81   : > { %v333_v27 = vrot.slane %v2641_v22, %v2421_v33  ;;  %vm297_vm2 = vcmp.ge.f32.partialorder %v2452_v50, %v274_v23  ;;  %vm352_vm3 = vcmp.lt.f32.partialorder %v2452_v50, %v329_v24  ;;  %v585_v29 = vmul.f32 %v563_v39, %v2452_v50 }
  0x82   : > { %v784_v28 = vmul.f32 %v768_v15, %v2639_v20  ;;  %v791_v30 = vadd.f32 %v783_v11, %v775_v17  ;;  %vm298_vm4 = vcmp.ge.f32.partialorder %v2452_v50, %v278_v16  ;;  %vm363_vm6 = vmand %vm297_vm2, %vm352_vm3  ;;  %v421_v32 = vrot.slane %v2641_v22, %v2423_v35  ;;  %v2693_v15 = vld [vmem:[#allocation5 + $0x48] sm:$0xff] }
  0x83   : > { %vm353_vm5 = vcmp.lt.f32.partialorder %v2452_v50, %v333_v27  ;;  %v1725_v36 = vsel %vm363_vm6, 1.0, %v2258_v62  ;;  %v440_v46 = vmul.f32 %v417_v25, %v2452_v50  ;;  %v472_v47 = vrot.slane %v2635_v18, %v2425_v37 }
  0x84   : > { %v792_v34 = vadd.f32 %v784_v28, %v776_v26  ;;  %vm364_vm7 = vmand %vm298_vm4, %vm353_vm5  ;;  %v807_v48 = vpack.c.bf16 %v791_v30, %v791_v30  ;;  %v441_v51 = vmul.f32 %v421_v32, %v2452_v50  ;;  %v476_v52 = vrot.slane %v2641_v22, %v2425_v37 }
  0x85   : > { %v2666_v49 = vsel %vm364_vm7, 1.0, %v2258_v62  ;;  %v495_v56 = vadd.f32 %v472_v47, %v440_v46  ;;  %v567_v57 = vrot.slane %v2635_v18, %v2431_v40  ;;  %v617_v59 = vrot.slane %v2635_v18, %v2433_v41 }
  0x86   : > { %v808_v53 = vpack.c.bf16 %v792_v34, %v792_v34  ;;  %v2675_v12 = vadd.f32 %v476_v52, %v441_v51  ;;  %v635_v21 = vadd.f32 %v613_v19, %v585_v29  ;;  %v695_v63 = vrot.slane %v2559_v2, %v2435_v42  ;;  %v2053_v19 = vld [vmem:[#allocation7 + $0x1e8] sm:$0xff]  }
  0x87   : > { %v699_v55 = vrot.slane %v2561_v3, %v2435_v42  ;;  %v505_v58 = vsub.f32 1.0, %v495_v56  ;;  %v516_v0 = vmul.f32 %v1725_v36, %v495_v56  ;;  %v586_v1 = vmul.f32 %v567_v57, %v2452_v50 }
  0x88   : > { %1462 = vmatprep.mubr.bf16.mxu1 %v808_v53  ;;  %v740_v4 = vrot.slane %v2559_v2, %v2437_v43  ;;  %v506_v7 = vsub.f32 1.0, %v2675_v12  ;;  %v644_v8 = vsub.f32 1.0, %v635_v21  ;;  %v716_v38 = vmul.f32 %v695_v63, %v2452_v50 }
  0x89   : > { %1463 = vmatmul.mubr.bf16.vlgmr.msra.gmra.mxu1 %v807_v48  ;;  %v717_v10 = vmul.f32 %v699_v55, %v2452_v50  ;;  %v525_v45 = vmul.f32 %v1725_v36, %v505_v58  ;;  %v2689_v39 = vadd.f32 %v617_v59, %v586_v1  ;;  %v744_v14 = vrot.slane %v2561_v3, %v2437_v43  ;;  %v2057_v36 = vld [vmem:[#allocation7 + $0x1e0] sm:$0xff]   ;;  %v2061_v55 = vld [vmem:[#allocation7 + $0x1d8] sm:$0xff]  }
  0x8a   : > { %1874 = vmatpush3.bf16.msra.mxu1 %v2046_v54  ;;  %v282_v2 = vrot.slane %v2687_v44, %v2419_v31  ;;  %v2084_v17 = vpop.eup %2083  ;;  %v526_v23 = vmul.f32 %v2666_v49, %v506_v7  ;;  %v653_v24 = vmul.f32 %v2612_v61, %v2623_v6  ;;  %v286_v25 = vrot.slane %v2693_v15, %v2419_v31  ;;  %v2054_v6 = vld [vmem:[#allocation7 + $0x1a8] sm:$0xff]  }
  0x8b   : > { %1875 = vmatprep.subr.bf16.mxu1 %v2049_v60  ;;  %v337_v26 = vrot.slane %v2687_v44, %v2421_v33  ;;  %v801_v3 = vadd.f32 1.0, %v2084_v17  ;;  %v535_v11 = vadd.f32 %v525_v45, %v2626_v9  ;;  %v645_v16 = vsub.f32 1.0, %v2689_v39  ;;  %v2058_v60 = vld [vmem:[#allocation7 + $0x1a0] sm:$0xff]  }
  0x8c   : > { %v2706_v27 = vadd.f32 %v744_v14, %v717_v10  ;;  %v536_v28 = vadd.f32 %v526_v23, %v516_v0  ;;  %v2708_v29 = vadd.f32 %v740_v4, %v716_v38  ;;  %vm2711_vm8 = vcmp.ge.f32.partialorder %v2452_v50, %v282_v2  ;;  %v2062_v2 = vld [vmem:[#allocation7 + $0x198] sm:$0xff]  }
  0x8d   : > { %vm2716_vm9 = vcmp.ge.f32.partialorder %v2452_v50, %v286_v25  ;;  %2085 = vrcp.f32 %v801_v3  ;;  %v654_v9 = vmul.f32 %v635_v21, %v535_v11  ;;  %v662_v32 = vmul.f32 %v644_v8, %v535_v11 }
  0x8e   : > { %1876 = vmatpush3.bf16.msra.mxu1 %v2050_v5  ;;  %v770_v34 = vsub.f32 1.0, %v2706_v27  ;;  %v663_v46 = vmul.f32 %v645_v16, %v536_v28  ;;  %v341_v47 = vrot.slane %v2693_v15, %v2421_v33  ;;  %vm354_vm10 = vcmp.lt.f32.partialorder %v2452_v50, %v337_v26 }
  0x8f   : > { %1877 = vmatprep.subr.bf16.mxu1 %v2053_v19  ;;  %v425_v48 = vrot.slane %v2687_v44, %v2423_v35  ;;  %v2726_v51 = vadd.f32 %v662_v32, %v653_v24  ;;  %vm365_vm11 = vmand %vm2711_vm8, %vm354_vm10  ;;  %v429_v52 = vrot.slane %v2693_v15, %v2423_v35  ;;  %v480_v53 = vrot.slane %v2687_v44, %v2425_v37  ;;  %v2065_v24 = vld [vmem:[#allocation7 + $0x1d0] sm:$0xff]  }
  0x90   : > { %v484_v54 = vrot.slane %v2693_v15, %v2425_v37  ;;  %v672_v56 = vadd.f32 %v663_v46, %v654_v9  ;;  %vm2737_vm12 = vcmp.lt.f32.partialorder %v2452_v50, %v341_v47  ;;  %v1727_v21 = vsel %vm365_vm11, 1.0, %v2258_v62 }
  0x91   : > { %v442_v59 = vmul.f32 %v425_v48, %v2452_v50  ;;  %vm366_vm13 = vmand %vm2716_vm9, %vm2737_vm12  ;;  %v443_v63 = vmul.f32 %v429_v52, %v2452_v50  ;;  %v778_v58 = vmul.f32 %v2708_v29, %v2726_v51  ;;  %v571_v4 = vrot.slane %v2641_v22, %v2431_v40  ;;  %v2069_v48 = vld [vmem:[#allocation7 + $0x1c8] sm:$0xff]  }
  0x92   : > { %1878 = vmatpush3.bf16.msra.mxu1 %v2054_v6  ;;  %v786_v0 = vmul.f32 %v770_v34, %v672_v56  ;;  %v575_v7 = vrot.slane %v2687_v44, %v2431_v40  ;;  %v621_v8 = vrot.slane %v2641_v22, %v2433_v41  ;;  %v2759_v38 = vsel %vm366_vm13, 1.0, %v2258_v62  ;;  %v2066_v34 = vld [vmem:[#allocation7 + $0x190] sm:$0xff]  }
  0x93   : > { %1879 = vmatprep.subr.bf16.mxu1 %v2057_v36  ;;  %v497_v1 = vadd.f32 %v480_v53, %v442_v59  ;;  %v2752_v5 = vadd.f32 %v484_v54, %v443_v63  ;;  %v517_v45 = vmul.f32 %v2666_v49, %v2675_v12  ;;  %v587_v14 = vmul.f32 %v571_v4, %v2452_v50 }
  0x94   : > { %v588_v23 = vmul.f32 %v575_v7, %v2452_v50  ;;  %v794_v25 = vadd.f32 %v786_v0, %v778_v58  ;;  %v625_v3 = vrot.slane %v2687_v44, %v2433_v41  ;;  %v655_v49 = vmul.f32 %v2689_v39, %v536_v28  ;;  %v2047_v7 = vld [vmem:[#allocation7 + $0x170] sm:$0xff]  }
  0x95   : > { %v507_v10 = vsub.f32 1.0, %v497_v1  ;;  %v508_v17 = vsub.f32 1.0, %v2752_v5  ;;  %v518_v19 = vmul.f32 %v1727_v21, %v497_v1  ;;  %v637_v11 = vadd.f32 %v621_v8, %v587_v14  ;;  %v2070_v8 = vld [vmem:[#allocation7 + $0x188] sm:$0xff]  }
  0x96   : > { %1880 = vmatpush3.bf16.msra.mxu1 %v2058_v60  ;;  %v703_v12 = vrot.slane %v2635_v18, %v2435_v42  ;;  %v707_v30 = vrot.slane %v2641_v22, %v2435_v42  ;;  %v2774_v6 = vadd.f32 %v625_v3, %v588_v23  ;;  %v748_v32 = vrot.slane %v2635_v18, %v2437_v43  ;;  %v246_v18 = vld [vmem:[#allocation5 + $0x50] sm:$0xff]  ;;  %v2051_v3 = vld [vmem:[#allocation7 + $0x168] sm:$0xff]  }
  0x97   : > { %1881 = vmatprep.subr.bf16.mxu1 %v2061_v55  ;;  %v527_v26 = vmul.f32 %v1727_v21, %v507_v10  ;;  %v528_v16 = vmul.f32 %v2759_v38, %v508_v17  ;;  %v646_v9 = vsub.f32 1.0, %v637_v11  ;;  %v752_v28 = vrot.slane %v2641_v22, %v2437_v43  ;;  %v2044_v55 = vld [vmem:[#allocation7 + $0x138] sm:$0xff]  }
  0x98   : > { %v718_v46 = vmul.f32 %v703_v12, %v2452_v50  ;;  %v719_v39 = vmul.f32 %v707_v30, %v2452_v50  ;;  %v810_v52 = vpack.c.bf16 %v794_v25, %v794_v25  ;;  %v647_v53 = vsub.f32 1.0, %v2774_v6 }
  0x99   : > { %v537_v61 = vadd.f32 %v527_v26, %v517_v45  ;;  %v2778_v36 = vadd.f32 %v528_v16, %v518_v19  ;;  %v779_v63 = vmul.f32 %v2706_v27, %v672_v56  ;;  %v290_v0 = vrot.slane %v246_v18, %v2419_v31 }
  0x9a   : > { %1882 = vmatpush3.bf16.msra.mxu1 %v2062_v2  ;;  %v2086_v47 = vpop.eup %2085  ;;  %v763_v60 = vadd.f32 %v748_v32, %v718_v46  ;;  %v2786_v21 = vadd.f32 %v752_v28, %v719_v39  ;;  %v345_v1 = vrot.slane %v246_v18, %v2421_v33  ;;  %v433_v14 = vrot.slane %v246_v18, %v2423_v35  ;;  %v2073_v2 = vld [vmem:[#allocation7 + $0x1c0] sm:$0xff]   ;;  %v2052_v32 = vld [vmem:[#allocation7 + $0x128] sm:$0xff]  }
  0x9b   : > { %1883 = vmatprep.subr.bf16.mxu1 %v2065_v24  ;;  %v656_v54 = vmul.f32 %v637_v11, %v537_v61  ;;  %v664_v57 = vmul.f32 %v646_v9, %v537_v61  ;;  %v804_v59 = vmul.f32 %v2086_v47, %v2452_v50  ;;  %v665_v58 = vmul.f32 %v647_v53, %v2778_v36  ;;  %v2048_v24 = vld [vmem:[#allocation7 + $0x130] sm:$0xff]   ;;  %v2074_v11 = vld [vmem:[#allocation7 + $0x180] sm:$0xff]  }
  0x9c   : > { %v771_v10 = vsub.f32 1.0, %v763_v60  ;;  %v772_v45 = vsub.f32 1.0, %v2786_v21  ;;  %vm2797_vm14 = vcmp.ge.f32.partialorder %v2452_v50, %v290_v0  ;;  %vm2802_vm15 = vcmp.lt.f32.partialorder %v2452_v50, %v345_v1  ;;  %v2055_v28 = vld [vmem:[#allocation7 + $0x160] sm:$0xff]  }
  0x9d   : > { %v673_v22 = vadd.f32 %v664_v57, %v655_v49  ;;  %v805_v4 = vpack.c.bf16 %v804_v59, %v804_v59  ;;  %v2794_v27 = vadd.f32 %v665_v58, %v656_v54  ;;  %vm367_vm0 = vmand %vm2797_vm14, %vm2802_vm15  ;;  %v444_v35 = vmul.f32 %v433_v14, %v2452_v50  ;;  %v2063_v57 = vld [vmem:[#allocation7 + $0x150] sm:$0xff]   ;;  %v2071_v58 = vld [vmem:[#allocation7 + $0x140] sm:$0xff]  }
  0x9e   : > { %1884 = vmatpush3.bf16.msra.mxu1 %v2066_v34  ;;  %v488_v19 = vrot.slane %v246_v18, %v2425_v37  ;;  %v579_v23 = vrot.slane %v2693_v15, %v2431_v40  ;;  %v629_v26 = vrot.slane %v2693_v15, %v2433_v41  ;;  %v1729_v40 = vsel %vm367_vm0, 1.0, %v2258_v62  ;;  %v2072_v0 = vld [vmem:[#allocation7 + $0x100] sm:$0xff]  }
  0x9f   : > { %1885 = vmatprep.subr.bf16.mxu1 %v2069_v48  ;;  %v780_v56 = vmul.f32 %v763_v60, %v673_v22  ;;  %1423 = vmatmul.mubr.bf16.vlgmr.msra.gmra.mxu0 %v805_v4  ;;  %v787_v33 = vmul.f32 %v771_v10, %v673_v22  ;;  %v788_v25 = vmul.f32 %v772_v45, %v2794_v27  ;;  %v769_v59 = vsub.f32 1.0, %v2708_v29  ;;  %v2064_v60 = vld [vmem:[#allocation7 + $0x110] sm:$0xff]   ;;  %v2075_v29 = vld [vmem:[#allocation7 + $0x238] sm:$0xff]   ;;  %v2081_v10 = vld [vmem:[#allocation7 + $0x208] sm:$0xff]  }
  0xa0   : > { %1852 = vmatpush3.bf16.msra.mxu0 %v2044_v55  ;;  %1502 = vmatprep.mubr.bf16.mxu0 %v810_v52  ;;  %v499_v49 = vadd.f32 %v488_v19, %v444_v35  ;;  %v589_v12 = vmul.f32 %v579_v23, %v2452_v50  ;;  %v711_v41 = vrot.slane %v2687_v44, %v2435_v42  ;;  %v2068_v55 = vld [vmem:[#allocation7 + $0x108] sm:$0xff]   ;;  %v2076_v4 = vld [vmem:[#allocation7 + $0x230] sm:$0xff]   ;;  %vm2259_vm1 = vmmov 0   ;;  %v2082_v14 = vld [vmem:[#allocation7 + $0x200] sm:$0xff]  }
  0xa1   : > { %1853 = vmatprep.subr.bf16.mxu0 %v2047_v7  ;;  %v795_v16 = vadd.f32 %v787_v33, %v779_v63  ;;  %v796_v37 = vadd.f32 %v788_v25, %v780_v56  ;;  %v756_v15 = vrot.slane %v2687_v44, %v2437_v43  ;;  %v519_v30 = vmul.f32 %v2759_v38, %v2752_v5  ;;  %v2056_v44 = vld [vmem:[#allocation7 + $0x120] sm:$0xff]   ;;  %v2059_v5 = vld [vmem:[#allocation7 + $0x158] sm:$0xff]   ;;  %v2067_v63 = vld [vmem:[#allocation7 + $0x148] sm:$0xff]  }
  0xa2   : > { %1886 = vmatpush3.bf16.msra.mxu1 %v2070_v8  ;;  %v509_v61 = vsub.f32 1.0, %v499_v49  ;;  %v639_v9 = vadd.f32 %v629_v26, %v589_v12  ;;  %v720_v39 = vmul.f32 %v711_v41, %v2452_v50  ;;  %v657_v43 = vmul.f32 %v2774_v6, %v2778_v36  ;;  %v2060_v50 = vld [vmem:[#allocation7 + $0x118] sm:$0xff]   ;;  %v2080_v7 = vld [vmem:[#allocation7 + $0x210] sm:$0xff]  }
  0xa3   : > { %1887 = vmatprep.subr.bf16.mxu1 %v2073_v2  ;;  %v812_v34 = vpack.c.bf16 %v796_v37, %v796_v37  ;;  %v811_v46 = vpack.c.bf16 %v795_v16, %v795_v16  ;;  %v777_v6 = vmul.f32 %v2628_v13, %v2639_v20  ;;  %v785_v36 = vmul.f32 %v769_v59, %v2726_v51  ;;  %v2077_v13 = vld [vmem:[#allocation7 + $0x228] sm:$0xff]   ;;  %v2078_v20 = vld [vmem:[#allocation7 + $0x220] sm:$0xff]   ;;  %v2079_v51 = vld [vmem:[#allocation7 + $0x218] sm:$0xff]  }
  0xa4   : > { %1854 = vmatpush3.bf16.msra.mxu0 %v2048_v24  ;;  %v529_v47 = vmul.f32 %v1729_v40, %v509_v61  ;;  %v648_v48 = vsub.f32 1.0, %v639_v9  ;;  %v765_v42 = vadd.f32 %v756_v15, %v720_v39  ;;  %v781_v8 = vmul.f32 %v2786_v21, %v2794_v27 }
  0xa5   : > { %1855 = vmatprep.subr.bf16.mxu0 %v2051_v3  ;;  %1542 = vmatprep.mubr.bf16.mxu1 %v812_v34  ;;  %v793_v22 = vadd.f32 %v785_v36, %v777_v6 }
  0xa6   : > { %1888 = vmatpush3.bf16.msra.mxu1 %v2074_v11  ;;  %v539_v52 = vadd.f32 %v529_v47, %v519_v30  ;;  %v773_v53 = vsub.f32 1.0, %v765_v42 }
  0xa7   : > { %v809_v1 = vpack.c.bf16 %v793_v22, %v793_v22 }
  0xa8   : > { %1856 = vmatpush3.bf16.msra.mxu0 %v2052_v32  ;;  %v666_v38 = vmul.f32 %v648_v48, %v539_v52 }
  0xa9   : > { %1543 = vmatmul.mubr.bf16.vlgmr.msra.gmra.mxu1 %v811_v46  ;;  %1857 = vmatprep.subr.bf16.mxu0 %v2055_v28 }
  0xaa   : > { %v675_v54 = vadd.f32 %v666_v38, %v657_v43 }
  0xac   : > { %1858 = vmatpush3.bf16.msra.mxu0 %v2056_v44  ;;  %v789_v18 = vmul.f32 %v773_v53, %v675_v54 }
  0xad   : > { %1859 = vmatprep.subr.bf16.mxu0 %v2059_v5 }
  0xae   : > { %v797_v45 = vadd.f32 %v789_v18, %v781_v8 }
  0xb0   : > { %1860 = vmatpush3.bf16.msra.mxu0 %v2060_v50  ;;  %v813_v2 = vpack.c.bf16 %v797_v45, %v797_v45 }
  0xb1   : > { %1861 = vmatprep.subr.bf16.mxu0 %v2063_v57 }
  0xb4   : > { %1862 = vmatpush3.bf16.msra.mxu0 %v2064_v60 }
  0xb5   : > { %1863 = vmatprep.subr.bf16.mxu0 %v2067_v63 }
  0xb8   : > { %1864 = vmatpush3.bf16.msra.mxu0 %v2068_v55 }
  0xb9   : > { %1865 = vmatprep.subr.bf16.mxu0 %v2071_v58 }
  0xbc   : > { %1866 = vmatpush3.bf16.msra.mxu0 %v2072_v0 }
  0xbd   : > { %1904 = vmatprep.subr.bf16.mxu0 %v2258_v62 }
  0xbf   : > { %1503 = vmatmul.mubr.bf16.vlgmr.msra.gmra.mxu0 %v809_v1 }
  0xc0   : > { %1905 = vmatpush3.bf16.msra.mxu0 %v2075_v29  ;;  %1920 = vmatprep.mubr.msk.bf16.mxu0 %vm2259_vm1, %v2258_v62 }
  0xc1   : > { %1906 = vmatprep.subr.bf16.mxu0 %v2258_v62 }
  0xc4   : > { %1907 = vmatpush3.bf16.msra.mxu0 %v2076_v4 }
  0xc5   : > { %1908 = vmatprep.subr.bf16.mxu0 %v2258_v62 }
  0xc8   : > { %1909 = vmatpush3.bf16.msra.mxu0 %v2077_v13 }
  0xc9   : > { %1910 = vmatprep.subr.bf16.mxu0 %v2258_v62 }
  0xcc   : > { %1911 = vmatpush3.bf16.msra.mxu0 %v2078_v20 }
  0xcd   : > { %1912 = vmatprep.subr.bf16.mxu0 %v2258_v62 }
  0xd0   : > { %1913 = vmatpush3.bf16.msra.mxu0 %v2079_v51 }
  0xd1   : > { %1914 = vmatprep.subr.bf16.mxu0 %v2258_v62 }
  0xd4   : > { %1915 = vmatpush3.bf16.msra.mxu0 %v2080_v7 }
  0xd5   : > { %1916 = vmatprep.subr.bf16.mxu0 %v2258_v62 }
  0xd8   : > { %1917 = vmatpush3.bf16.msra.mxu0 %v2081_v10 }
  0xd9   : > { %1918 = vmatprep.subr.bf16.mxu0 %v2258_v62 }
  0xdc   : > { %1919 = vmatpush3.bf16.msra.mxu0 %v2082_v14 }
  0xdf   : > { %1921 = vmatmul.mubr.bf16.vlgmr.msra.gmra.mxu0 %v813_v2 }
 0x149   : > { %v1845_v56 = vpop.f32.mrf.mxu1 }
 0x14b   : > { %v1846_v17 = vpop.f32.mrf.mxu1 }
 0x14c   : > { %v1847_v31 = vadd.f32 %v1846_v17, %v1845_v56 }
 0x14d   : > { %v1848_v33 = vpop.f32.mrf.mxu1 }
 0x14f   : > { %v1849_v35 = vpop.f32.mrf.mxu1 }
 0x15f   : > { %v1823_v19 = vpop.f32.mrf.mxu0 }
 0x161   : > { %v1824_v23 = vpop.f32.mrf.mxu0 }
 0x162   : > { %v1825_v12 = vadd.f32 %v1824_v23, %v1823_v19 }
 0x163   : > { %v1826_v21 = vpop.f32.mrf.mxu0 }
 0x164   : > { %v1465_v40 = vadd.f32 %v1847_v31, %v1825_v12 }
 0x165   : > { %v1827_v27 = vpop.f32.mrf.mxu0 }
 0x169   : > { %v1889_v24 = vpop.f32.mrf.mxu1 }
 0x16b   : > { %v1890_v25 = vpop.f32.mrf.mxu1 }
 0x16c   : > { %v1891_v15 = vadd.f32 %v1890_v25, %v1889_v24 }
 0x16d   : > { %v1892_v26 = vpop.f32.mrf.mxu1 }
 0x16f   : > { %v1893_v3 = vpop.f32.mrf.mxu1 }
 0x17f   : > { %v1867_v11 = vpop.f32.mrf.mxu0 }
 0x181   : > { %v1868_v62 = vpop.f32.mrf.mxu0 }
 0x182   : > { %v1869_v37 = vadd.f32 %v1868_v62, %v1867_v11 }
 0x183   : > { %v1870_v16 = vpop.f32.mrf.mxu0 }
 0x184   : > { %v1505_v41 = vadd.f32 %v1869_v37, %v1465_v40 }
 0x185   : > { %v1871_v49 = vpop.f32.mrf.mxu0 }
 0x186   : > { %v1545_v30 = vadd.f32 %v1891_v15, %v1505_v41 }
 0x19f   : > { %v1584_v61 = vpop.f32.mrf.mxu0 }
 0x1a0   : > { %v1585_v9 = vadd.f32 %v1584_v61, %v1545_v30 }
 0x1a1   : > { %v1922_v32 = vpop.f32.mrf.mxu0 }
 0x1a2   : > { %1590 = vst [vmem:[%s233_s22] sm:$0xff] %v1585_v9 }
 0x1a3   : > { %v1587_v34 = vpop.f32.mrf.mxu0 }
 0x1a4   : > { %2180 = shalt.err (!%p2177_p0)
}
 0x1a5   : > { %s2181_s10 = scalar_lea.hbm %s2854_s6, 128  ;;  %s2185_s26 = scalar_lea.hbm %s2905_s3, 256 }
 0x1a6   : > { %p2182_p1 = scmp.ne.s32.totalorder %s2854_s6, %s2181_s10  ;;  %p2186_p6 = scmp.lt.s32.totalorder %s2854_s6, %s2905_s3 }
 0x1a7   : > { %p2187_p8 = scmp.lt.s32.totalorder %s2185_s26, %s2181_s10 }
 0x1a8   : > { %p2183_p2 = pnand %p2182_p1, %p2376_p12 }
 0x1a9   : > { %p2188_p9 = por %p2187_p8, %p2186_p6 }
 0x1aa   : > { %p2184_p4 = pneg %p2183_p2 }
 0x1ac   : > { %p2189_p3 = pnand %p2188_p9, %p2184_p4 }
 0x1ae   : > { %2192 = shalt.err (!%p2189_p3)
}
 0x1af   : > { %1934 = dma.vmem_to_hbm [thread:$0]  (%p2376_p12), %s2856_s24, 128, %s2854_s6, %s1592_s15   ;;  %v1923_v46 = vpop.f32.mrf.mxu0 }
 0x1b0 PF: > { %s1618_s30 = sand.u32 1, %s2231_s12   ;;  %p2946_p11 = scmp.ne.s32.totalorder %s2913_s23, 0 }
 0x1b1   : > { %p2947_p5 = scmp.ge.s32.totalorder %s2251_s17, 2  ;;  %s1619_s20 = scalar_lea.sflag [#allocation4], %s1618_s30 }
 0x1b3   : > { %p1948_p7 = pnand %p2947_p5, %p2946_p11 }
 0x1b5   : > { %p1949_p10 = pneg %p1948_p7 }
 0x1b7   : > { %2226 = dma.done.wait (%p1949_p10), %s1619_s20, 128  }
 0x1b8   : > { %2228 = vsyncadd (%p1949_p10), %s1619_s20, 4294967168  ;;  %s20_s17 = sadd.s32 1, %s2251_s17   ;;  %s2948_s12 = smov %s2235_s13 }
 0x1b9   : > { %p17_p13 = scmp.ge.s32.totalorder %s20_s17, 4   ;;  %s2949_s13 = smov %s2239_s14 }
 0x1ba   : > { %s2950_s14 = smov %s2385_s29  ;;  %s2951_s15 = smov %s2247_s16 }
 0x1bb   : > { %s2952_s16 = smov %s2954_s11  ;;  %19 = sbr.rel (!%p17_p13) target bundleno = 7 (0x7), region = 86 }
 0x1c0   :  { %1624 = vsyncpa [#allocation3], 1 }
 0x1c1   :  { %1626 = vsyncpa [#allocation3 + $0x1], 1 }
 0x1c2   :  { %1627 = vsyncpa [#allocation6], 1 }
 0x1c3   :  { %1628 = vsyncpa [#allocation4], 1 }
 0x1c4   :  { %1630 = vsyncpa [#allocation4 + $0x1], 1 }

</bundles_post_ra>
